<compile_context>
chip_gen: v6e
topology: v6e:2x2x1
jax: 0.10.0
libtpu: 0.0.40
codegen_flags: <defaults>
</compile_context>

<pallas_src>
import jax
import jax.numpy as jnp
from jax.experimental import pallas as pl
from jax.experimental.pallas import tpu as pltpu

LANE = 128
SUBLANE = 8  # f32 sublane granularity


def _round_up(n, m):
    return ((n + m - 1) // m) * m


def _pick_block_b(B):
    """Largest multiple-of-8 divisor of B that is <= min(512, B // 2).

    Caps the batch tile so the grid has several steps (software pipelining of the
    x stream + megacore sharding on v7x) while respecting the (8, 128) block
    constraint. Falls back to the full batch for tiny / awkward B.
    """
    if B < 2 * SUBLANE:
        return B
    target = min(512, B // 2)
    for cand in range(target, SUBLANE - 1, -1):
        if B % cand == 0 and cand % SUBLANE == 0:
            return cand
    return B


def _make_mlp_softmax_kernel(n_layers):
    """Kernel factory: refs = (x, w_0, b_0, ..., w_{L-1}, b_{L-1}, out)."""

    def kernel(*refs):
        x_ref = refs[0]
        out_ref = refs[-1]

        h = x_ref[...]                      # bf16 batch tile, (tb, D0_pad)
        z = None
        for l in range(n_layers):
            w_ref = refs[1 + 2 * l]
            b_ref = refs[2 + 2 * l]
            # MXU matmul with f32 accumulation, bias add in f32 on the VPU.
            z = jnp.dot(h, w_ref[...], preferred_element_type=jnp.float32)
            z = z + b_ref[...]
            if l < n_layers - 1:
                # ReLU in f32, then back to bf16 for the next MXU pass. Padded
                # lanes stay exactly 0 (zero weights + zero bias).
                h = jnp.maximum(z, 0.0).astype(w_ref.dtype)

        logits = z                           # final bias has -inf on padded lanes
        # Numerically stable softmax over the 128-lane-padded action axis.
        m = jnp.max(logits, axis=1, keepdims=True)
        e = jnp.exp(logits - m)              # padded lanes: exp(-inf) = 0
        denom = jnp.sum(e, axis=1, keepdims=True)
        out_ref[...] = (e * pl.reciprocal(denom, approx=False)).astype(out_ref.dtype)

    return kernel


def policy_net_discrete_forward(x, params, *, block_b=None, mxu_dtype=jnp.bfloat16):
    """Forward pass of PolicyNetDiscrete.

    x:      (B, state_dim) float32
    params: list of (w, b) per Linear layer, with w pre-transposed to (in, out)
            and b of shape (out,). ReLU after every layer except the last;
            softmax(dim=1) after the last.
    Returns softmax probabilities (B, action_dim), float32.
    """
    B, S = x.shape
    n_layers = len(params)
    assert n_layers >= 1

    dims = [S] + [w.shape[1] for (w, _) in params]
    for l, (w, b) in enumerate(params):
        assert w.shape == (dims[l], dims[l + 1]), f"layer {l} weight shape mismatch"
        assert b.shape == (dims[l + 1],), f"layer {l} bias shape mismatch"
    dims_pad = [_round_up(d, LANE) for d in dims]
    A, A_pad = dims[-1], dims_pad[-1]

    if block_b is None:
        block_b = _pick_block_b(B)
    assert B % block_b == 0, "block_b must divide the batch"
    assert block_b == B or block_b % SUBLANE == 0, \
        "batch tile must be a multiple of 8 rows (f32 sublane granularity)"
    grid = (B // block_b,)

    # One-time layout plumbing: pad feature dims to full 128-lane width and cast
    # the MXU operands to bf16 (halves HBM bytes of the dominant x stream).
    xp = jnp.zeros((B, dims_pad[0]), mxu_dtype).at[:, :S].set(x.astype(mxu_dtype))

    padded_params = []
    for l, (w, b) in enumerate(params):
        din, dout = dims[l], dims[l + 1]
        dinp, doutp = dims_pad[l], dims_pad[l + 1]
        wp = jnp.zeros((dinp, doutp), mxu_dtype).at[:din, :dout].set(
            w.astype(mxu_dtype))
        if l == n_layers - 1:
            # -inf bias on padded action lanes => exp of those lanes is exactly 0,
            # so the softmax denominator and real-lane probabilities are unaffected.
            bp = jnp.full((1, doutp), -jnp.inf, jnp.float32).at[:, :dout].set(
                b.astype(jnp.float32))
        else:
            bp = jnp.zeros((1, doutp), jnp.float32).at[:, :dout].set(
                b.astype(jnp.float32))
        padded_params += [wp, bp]

    in_specs = [pl.BlockSpec((block_b, dims_pad[0]), lambda i: (i, 0))]  # x tile
    for l in range(n_layers):
        in_specs.append(pl.BlockSpec((dims_pad[l], dims_pad[l + 1]),
                                     lambda i: (0, 0)))                  # W_l resident
        in_specs.append(pl.BlockSpec((1, dims_pad[l + 1]),
                                     lambda i: (0, 0)))                  # b_l resident

    itemsize = jnp.dtype(mxu_dtype).itemsize
    w_bytes = sum(dims_pad[l] * dims_pad[l + 1] for l in range(n_layers)) * itemsize
    b_bytes = sum(dims_pad[l + 1] for l in range(n_layers)) * 4
    cost = pl.CostEstimate(
        flops=int(2 * B * sum(dims_pad[l] * dims_pad[l + 1] for l in range(n_layers))),
        transcendentals=int(B * A_pad),
        bytes_accessed=int(B * dims_pad[0] * itemsize       # x stream
                           + w_bytes + b_bytes              # resident params
                           + B * A_pad * 4),                # output
    )

    out = pl.pallas_call(
        _make_mlp_softmax_kernel(n_layers),
        out_shape=jax.ShapeDtypeStruct((B, A_pad), jnp.float32),
        grid_spec=pltpu.PrefetchScalarGridSpec(
            num_scalar_prefetch=0,
            grid=grid,
            in_specs=in_specs,
            out_specs=pl.BlockSpec((block_b, A_pad), lambda i: (i, 0)),
        ),
        compiler_params=pltpu.CompilerParams(
            dimension_semantics=("parallel",),
        ),
        cost_estimate=cost,
    )(xp, *padded_params)

    return out[:, :A]


def _init_linear(key, fan_in, fan_out):
    # Mimic PyTorch nn.Linear default init: U(-1/sqrt(fan_in), 1/sqrt(fan_in)),
    # weight stored pre-transposed as (in, out).
    kw, kb = jax.random.split(key)
    bound = 1.0 / jnp.sqrt(float(fan_in))
    w = jax.random.uniform(kw, (fan_in, fan_out), jnp.float32, -bound, bound)
    b = jax.random.uniform(kb, (fan_out,), jnp.float32, -bound, bound)
    return w, b


def _reference(x, params, mxu_dtype=None):
    # Pure-JAX reference. With mxu_dtype set it mirrors the kernel's dtype handling
    # (bf16 MXU inputs, f32 accumulation / elementwise); otherwise full f32.
    h = x
    for l, (w, b) in enumerate(params):
        if mxu_dtype is not None:
            z = jnp.dot(h.astype(mxu_dtype), w.astype(mxu_dtype),
                        preferred_element_type=jnp.float32) + b
        else:
            z = h @ w + b
        h = jnp.maximum(z, 0.0) if l < len(params) - 1 else z
    return jax.nn.softmax(h, axis=1)


if __name__ == "__main__":
    # Shapes consistent with the module: state_dim=16, hidden_dim=32, action_dim=8;
    # batch=64 so the auto-picked tile (32) gives a 2-step grid.
    B, STATE_DIM, HIDDEN_DIM, ACTION_DIM = 64, 16, 32, 8

    key = jax.random.PRNGKey(0)
    kx, k1, k2, kx2, k3, k4, k5 = jax.random.split(key, 7)

    # --- single hidden layer (hidden_dim given as an int in the module) ---
    x = jax.random.normal(kx, (B, STATE_DIM), jnp.float32)
    w1, b1 = _init_linear(k1, STATE_DIM, HIDDEN_DIM)
    w2, b2 = _init_linear(k2, HIDDEN_DIM, ACTION_DIM)
    params = [(w1, b1), (w2, b2)]

    probs = jax.block_until_ready(policy_net_discrete_forward(x, params))

    assert probs.shape == (B, ACTION_DIM)
    assert bool(jnp.all(jnp.isfinite(probs)))
    assert jnp.allclose(jnp.sum(probs, axis=1), 1.0, atol=1e-5)
    # Tight check vs. a reference with matching bf16-MXU semantics.
    assert jnp.allclose(probs, _reference(x, params, jnp.bfloat16), atol=1e-4, rtol=1e-4)
    # Loose sanity check vs. the full-f32 reference (bf16 matmul inputs round logits).
    assert jnp.allclose(probs, _reference(x, params), atol=2e-2)

    # --- multi hidden layer (hidden_dim given as a list, as the module allows) ---
    B2 = 32
    x2 = jax.random.normal(kx2, (B2, STATE_DIM), jnp.float32)
    wa, ba = _init_linear(k3, STATE_DIM, 32)
    wb, bb = _init_linear(k4, 32, 16)
    wc, bc = _init_linear(k5, 16, ACTION_DIM)
    params2 = [(wa, ba), (wb, bb), (wc, bc)]

    probs2 = jax.block_until_ready(policy_net_discrete_forward(x2, params2))

    assert probs2.shape == (B2, ACTION_DIM)
    assert bool(jnp.all(jnp.isfinite(probs2)))
    assert jnp.allclose(jnp.sum(probs2, axis=1), 1.0, atol=1e-5)
    assert jnp.allclose(probs2, _reference(x2, params2, jnp.bfloat16),
                        atol=1e-4, rtol=1e-4)

    print("KERNEL_OK")
</pallas_src>

<mosaic_0001>
module attributes {stable_mosaic.version = 11 : i64} {
  func.func @kernel(%arg0: i32, %arg1: memref<32x128xbf16, #tpu.memory_space<vmem>>, %arg2: memref<128x128xbf16, #tpu.memory_space<vmem>>, %arg3: memref<1x128xf32, #tpu.memory_space<vmem>>, %arg4: memref<128x128xbf16, #tpu.memory_space<vmem>>, %arg5: memref<1x128xf32, #tpu.memory_space<vmem>>, %arg6: memref<32x128xf32, #tpu.memory_space<vmem>>) attributes {dimension_semantics = [#tpu.dimension_semantics<parallel>], iteration_bounds = array<i64: 2>, scalar_prefetch = 0 : i64, scratch_operands = 0 : i64, tpu.core_type = #tpu.core_type<tc>, window_params = [{transform_indices = @transform_0, window_bounds = array<i64: 32, 128>}, {pipeline_mode = #tpu.pipeline_mode<synchronous>, transform_indices = @transform_1, window_bounds = array<i64: 128, 128>}, {pipeline_mode = #tpu.pipeline_mode<synchronous>, transform_indices = @transform_2, window_bounds = array<i64: 1, 128>}, {pipeline_mode = #tpu.pipeline_mode<synchronous>, transform_indices = @transform_3, window_bounds = array<i64: 128, 128>}, {pipeline_mode = #tpu.pipeline_mode<synchronous>, transform_indices = @transform_4, window_bounds = array<i64: 1, 128>}, {transform_indices = @transform_5, window_bounds = array<i64: 32, 128>}]} {
    %c0 = arith.constant 0 : index
    %c0_0 = arith.constant 0 : index
    %0 = vector.load %arg1[%c0, %c0_0] : memref<32x128xbf16, #tpu.memory_space<vmem>>, vector<32x128xbf16>
    %c0_1 = arith.constant 0 : index
    %c0_2 = arith.constant 0 : index
    %1 = vector.load %arg2[%c0_1, %c0_2] : memref<128x128xbf16, #tpu.memory_space<vmem>>, vector<128x128xbf16>
    %cst = arith.constant dense<0.000000e+00> : vector<32x128xf32>
    %2 = tpu.matmul %0, %1, %cst {dimension_numbers = #tpu.dot_dimension_numbers<[1], [0], [0], [1], [0, 0, 1, 1], [], []>} : vector<32x128xbf16>, vector<128x128xbf16>, vector<32x128xf32> -> vector<32x128xf32>
    %c0_3 = arith.constant 0 : index
    %c0_4 = arith.constant 0 : index
    %3 = vector.load %arg3[%c0_3, %c0_4] : memref<1x128xf32, #tpu.memory_space<vmem>>, vector<1x128xf32>
    %4 = vector.broadcast %3 : vector<1x128xf32> to vector<32x128xf32>
    %5 = arith.addf %2, %4 : vector<32x128xf32>
    %cst_5 = arith.constant 0.000000e+00 : f32
    %6 = vector.broadcast %cst_5 : f32 to vector<32x128xf32>
    %7 = arith.maximumf %5, %6 : vector<32x128xf32>
    %8 = arith.truncf %7 : vector<32x128xf32> to vector<32x128xbf16>
    %c0_6 = arith.constant 0 : index
    %c0_7 = arith.constant 0 : index
    %9 = vector.load %arg4[%c0_6, %c0_7] : memref<128x128xbf16, #tpu.memory_space<vmem>>, vector<128x128xbf16>
    %cst_8 = arith.constant dense<0.000000e+00> : vector<32x128xf32>
    %10 = tpu.matmul %8, %9, %cst_8 {dimension_numbers = #tpu.dot_dimension_numbers<[1], [0], [0], [1], [0, 0, 1, 1], [], []>} : vector<32x128xbf16>, vector<128x128xbf16>, vector<32x128xf32> -> vector<32x128xf32>
    %c0_9 = arith.constant 0 : index
    %c0_10 = arith.constant 0 : index
    %11 = vector.load %arg5[%c0_9, %c0_10] : memref<1x128xf32, #tpu.memory_space<vmem>>, vector<1x128xf32>
    %12 = vector.broadcast %11 : vector<1x128xf32> to vector<32x128xf32>
    %13 = arith.addf %10, %12 : vector<32x128xf32>
    %cst_11 = arith.constant dense<0xFF800000> : vector<32xf32>
    %14 = vector.multi_reduction <maximumf>, %13, %cst_11 [1] : vector<32x128xf32> to vector<32xf32>
    %15 = vector.shape_cast %14 : vector<32xf32> to vector<32x1xf32>
    %16 = vector.broadcast %15 : vector<32x1xf32> to vector<32x128xf32>
    %17 = arith.subf %13, %16 : vector<32x128xf32>
    %18 = math.exp %17 : vector<32x128xf32>
    %cst_12 = arith.constant dense<0.000000e+00> : vector<32xf32>
    %19 = vector.multi_reduction <add>, %18, %cst_12 [1] : vector<32x128xf32> to vector<32xf32>
    %20 = vector.shape_cast %19 : vector<32xf32> to vector<32x1xf32>
    %21 = tpu.reciprocal %20 : vector<32x1xf32> -> vector<32x1xf32>
    %22 = vector.broadcast %21 : vector<32x1xf32> to vector<32x128xf32>
    %23 = arith.mulf %18, %22 : vector<32x128xf32>
    %c0_13 = arith.constant 0 : index
    %c0_14 = arith.constant 0 : index
    %24 = vector.load %arg6[%c0_13, %c0_14] : memref<32x128xf32, #tpu.memory_space<vmem>>, vector<32x128xf32>
    tpu.vector_store %arg6[%c0_13, %c0_14], %23 {strides = array<i32>} : memref<32x128xf32, #tpu.memory_space<vmem>>, vector<32x128xf32>,
    return
  }
  func.func @transform_0(%arg0: i32) -> (i32, i32) {
    %c0_i32 = arith.constant 0 : i32
    %c0_i32_0 = arith.constant 0 : i32
    return %arg0, %c0_i32 : i32, i32
  }
  func.func @transform_1(%arg0: i32) -> (i32, i32) {
    %c0_i32 = arith.constant 0 : i32
    %c0_i32_0 = arith.constant 0 : i32
    %c0_i32_1 = arith.constant 0 : i32
    return %c0_i32, %c0_i32_0 : i32, i32
  }
  func.func @transform_2(%arg0: i32) -> (i32, i32) {
    %c0_i32 = arith.constant 0 : i32
    %c0_i32_0 = arith.constant 0 : i32
    %c0_i32_1 = arith.constant 0 : i32
    return %c0_i32, %c0_i32_0 : i32, i32
  }
  func.func @transform_3(%arg0: i32) -> (i32, i32) {
    %c0_i32 = arith.constant 0 : i32
    %c0_i32_0 = arith.constant 0 : i32
    %c0_i32_1 = arith.constant 0 : i32
    return %c0_i32, %c0_i32_0 : i32, i32
  }
  func.func @transform_4(%arg0: i32) -> (i32, i32) {
    %c0_i32 = arith.constant 0 : i32
    %c0_i32_0 = arith.constant 0 : i32
    %c0_i32_1 = arith.constant 0 : i32
    return %c0_i32, %c0_i32_0 : i32, i32
  }
  func.func @transform_5(%arg0: i32) -> (i32, i32) {
    %c0_i32 = arith.constant 0 : i32
    %c0_i32_0 = arith.constant 0 : i32
    return %arg0, %c0_i32 : i32, i32
  }
}

</mosaic_0001>

<bundles_post_ra>
// kernel: tpu_custom_call.1
= control target key start
LH: loop header
LB: loop body
LE: loop exit
PB: predicated region body
PF: predicated region fallthrough
CT: control target
= control target key end

     0   :  { %10 = vsyncpa [#allocation3], 0  ;;  %s1284_s0 = inlined_call_operand.hbm [shape: bf16[64,128], index: 0, kind: input, shape index: {}]   ;;  %s1285_s1 = inlined_call_operand.hbm [shape: bf16[128,128], index: 1, kind: input, shape index: {}]   ;;  %s1286_s2 = inlined_call_operand.vmem [shape: f32[1,128], index: 2, kind: input, shape index: {}]   ;;  %s1287_s3 = inlined_call_operand.hbm [shape: bf16[128,128], index: 3, kind: input, shape index: {}]   ;;  %s1288_s4 = inlined_call_operand.vmem [shape: f32[1,128], index: 4, kind: input, shape index: {}]   ;;  %s1289_s5 = inlined_call_operand.hbm [shape: f32[64,128], index: 5, kind: output, shape index: {}]  }
   0x1   :  { %12 = vsyncpa [#allocation3 + $0x1], 0 }
   0x2   :  { %13 = vsyncpa [#allocation6], 0 }
   0x3   :  { %14 = vsyncpa [#allocation4], 0 }
   0x4   :  { %16 = vsyncpa [#allocation4 + $0x1], 0  ;;  %s1076_s18 = smov 0   ;;  %s1078_s19 = smov 0  }
   0x5   :  { %s1080_s20 = smov 0   ;;  %s1082_s21 = smov 0  }
   0x6 LB: > { %s1097_s22 = sadd.s32 4294967295, %s1036_s21   ;;  %s683_s23 = sadd.s32 4294967294, %s1036_s21   ;;  %s1036_s21 = sphi %s1082_s21, %s1312_s21   ;;  %s1032_s20 = sphi %s1080_s20, %s1311_s20   ;;  %s1028_s19 = sphi %s1078_s19, %s1310_s19   ;;  %s1024_s18 = sphi %s1076_s18, %s1309_s18  }
   0x7   : > { %p42_p0 = scmp.ne.s32.totalorder %s1028_s19, %s1024_s18  ;;  %p1290_p1 = scmp.eq.s32.totalorder %s1097_s22, 0 }
   0x8   : > { %p150_p2 = scmp.eq.s32.totalorder %s1097_s22, 1  ;;  %p156_p3 = scmp.eq.s32.totalorder %s683_s23, 1 }
   0x9   : > { %p1106_p4 = por %p1290_p1, %p42_p0  ;;  %p684_p5 = scmp.ge.s32.totalorder %s1036_s21, 1 }
   0xa   : > { %p1111_p6 = por %p156_p3, %p42_p0  ;;  %p163_p7 = scmp.lt.s32.totalorder %s1036_s21, 3 }
   0xb   : > { %s1295_s24 = scalar_select %p1106_p4, 1, 0 }
   0xc   : > { %s1296_s25 = scalar_select %p1111_p6, 1, 0 }
   0xd   : > { %p1116_p8 = pnand %p684_p5, %p163_p7  ;;  %s1038_s27 = smov [#allocation5]  }
   0xe   : > { %s175_s28 = sshll.u32 %s1038_s27, 4  ;;  %s1039_s30 = smov [#allocation7]   ;;  %s176_s28 = int_to_ptr.vmem [resolvable:$true] %s175_s28 }
   0xf   : > { %s1297_s26 = scalar_select %p1116_p8, 1, 0 }
  0x10   : > { %p795_p9 = pneg %p1116_p8  ;;  %s191_s6 = sshll.u32 %s1039_s30, 4  ;;  %s192_s6 = int_to_ptr.vmem [resolvable:$true] %s191_s6 }
  0x11   : > { %s899_s7 = scalar_lea.vmem %s176_s28, 1024  ;;  %p907_p5 = scmp.lt.s32.totalorder %s176_s28, %s176_s28 }
  0x12   : > { %p1125_p11 = pnand %p795_p9, %p1290_p1  ;;  %p900_p13 = scmp.ne.s32.totalorder %s176_s28, %s899_s7 }
  0x13   : > { %p908_p7 = scmp.lt.s32.totalorder %s899_s7, %s899_s7 }
  0x14   : > { %p890_p12 = pneg %p1125_p11 }
  0x15   : > { %p909_p10 = por %p908_p7, %p907_p5 }
  0x16   : > { %p902_p0 = pnand %p900_p13, %p890_p12 }
  0x18   : > { %p903_p3 = pneg %p902_p0 }
  0x1a   : > { %p910_p9 = pnand %p909_p10, %p903_p3 }
  0x1c   : > { %913 = shalt.err (!%p910_p9)
}
  0x1d   : > { %s1291_s8 = smov 64   ;;  %s1041_s9 = smov 4  }
  0x1e   : > { %798 = dma.hbm_to_vmem [thread:$0]  (!%p1125_p11), %s1285_s1, 1024, %s176_s28, [#allocation6], %s1291_s8, %s1291_s8, %s1041_s9  }
  0x1f   : > { %s925_s12 = scalar_lea.vmem %s192_s6, 1024  ;;  %p933_p10 = scmp.lt.s32.totalorder %s192_s6, %s192_s6 }
  0x20   : > { %p926_p13 = scmp.ne.s32.totalorder %s192_s6, %s925_s12  ;;  %p934_p3 = scmp.lt.s32.totalorder %s925_s12, %s925_s12 }
  0x22   : > { %p928_p0 = pnand %p926_p13, %p890_p12  ;;  %p935_p7 = por %p934_p3, %p933_p10 }
  0x24   : > { %p929_p5 = pneg %p928_p0 }
  0x26   : > { %p936_p9 = pnand %p935_p7, %p929_p5 }
  0x28   : > { %939 = shalt.err (!%p936_p9)
}
  0x29   : > { %801 = dma.hbm_to_vmem [thread:$0]  (!%p1125_p11), %s1287_s3, 1024, %s192_s6, [#allocation6], %s1291_s8, %s1291_s8, %s1041_s9  }
  0x2a   : > { %s1154_s15 = sadd.s32 1, %s1036_s21   ;;  %s29_s16 = sadd.s32 1, %s1032_s20 }
  0x2b   : > { %s26_s17 = ssub.s32 %s1036_s21, %s1154_s15  ;;  %p36_p12 = scmp.ne.s32.totalorder %s1032_s20, %s1028_s19 }
  0x2c   : > { %p27_p13 = scmp.eq.s32.totalorder %s26_s17, 0  ;;  %p37_p0 = scmp.eq.s32.totalorder %s1036_s21, 0 }
  0x2d   : > { %p1164_p5 = por %p150_p2, %p36_p12  ;;  %p812_p10 = scmp.lt.s32.totalorder %s1036_s21, 2 }
  0x2e   : > { %s1170_s27 = scalar_select %p27_p13, %s1032_s20, %s29_s16  }
  0x2f   : > { %s1299_s23 = scalar_select %p1164_p5, 1, 0 }
  0x30   : > { %p38_p3 = por %p37_p0, %p36_p12  ;;  %s208_s28 = sand.u32 1, %s1032_s20  }
  0x31   : > { %s688_s29 = sshll.u32 %s208_s28, 4  ;;  %s721_s30 = sshll.u32 %s1036_s21, 8 }
  0x32   : > { %s1177_s10 = scalar_lea.hbm %s1284_s0, %s721_s30  ;;  %s212_s11 = scalar_lea.vmem [#allocation2], %s688_s29 }
  0x33   : > { %s219_s12 = sshll.u32 %s212_s11, 4  ;;  %p1181_p2 = pnand %p812_p10, %p38_p3  ;;  %s1179_s12 = int_to_ptr.vmem [resolvable:$true] %s219_s12 }
  0x34   : > { %s1185_s14 = scalar_lea.sflag [#allocation3], %s208_s28  ;;  %s940_s16 = scalar_lea.hbm %s1177_s10, 256 }
  0x35   : > { %p941_p11 = scmp.ne.s32.totalorder %s1177_s10, %s940_s16  ;;  %p942_p7 = pneg %p1181_p2 }
  0x36   : > { %s945_s29 = scalar_lea.hbm %s1284_s0, 512  ;;  %p946_p13 = scmp.lt.s32.totalorder %s1177_s10, %s1284_s0 }
  0x37   : > { %p943_p9 = pnand %p942_p7, %p941_p11  ;;  %p947_p0 = scmp.lt.s32.totalorder %s945_s29, %s940_s16 }
  0x39   : > { %p944_p12 = pneg %p943_p9  ;;  %p948_p10 = por %p947_p0, %p946_p13 }
  0x3b   : > { %p949_p3 = pnand %p948_p10, %p944_p12 }
  0x3d   : > { %952 = shalt.err (!%p949_p3)
}
  0x3e   : > { %s953_s28 = scalar_lea.vmem %s1179_s12, 256  ;;  %s1042_s11 = smov [#allocation2]  }
  0x3f   : > { %p954_p1 = scmp.ne.s32.totalorder %s1179_s12, %s953_s28  ;;  %s958_s8 = sshll.u32 %s1042_s11, 4  ;;  %s959_s8 = int_to_ptr.vmem [resolvable:$false] %s958_s8 }
  0x40   : > { %s960_s17 = scalar_lea.vmem %s959_s8, 512  ;;  %p961_p9 = scmp.lt.s32.totalorder %s1179_s12, %s959_s8 }
  0x41   : > { %p956_p6 = pnand %p954_p1, %p942_p7  ;;  %p962_p5 = scmp.lt.s32.totalorder %s960_s17, %s953_s28 }
  0x43   : > { %p957_p11 = pneg %p956_p6  ;;  %p963_p4 = por %p962_p5, %p961_p9 }
  0x45   : > { %p964_p8 = pnand %p963_p4, %p957_p11 }
  0x47   : > { %967 = shalt.err (!%p964_p8)
}
  0x48   : > { %s1301_s16 = smov 64   ;;  %p1302_p1 = scmp.ne.s32.totalorder %s1297_s26, 0 }
  0x49   : > { %805 = dma.hbm_to_vmem [thread:$0]  (!%p1181_p2), %s1177_s10, 256, %s1179_s12, %s1185_s14, %s1301_s16, %s1301_s16, %s1041_s9  }
  0x4a   : > { %231 = sbr.rel (%p1302_p1) target bundleno = 851 (0x353), region = 40  ;;  %s1212_s30 = sand.u32 (!%p1302_p1), 1, %s1028_s19  }
  0x4b   : > { %s692_s8 = sshll.u32 (!%p1302_p1), %s1212_s30, 4  ;;  %s234_s29 = scalar_lea.sflag (!%p1302_p1), [#allocation3], %s1212_s30 }
  0x4c   : > { %s1216_s6 = scalar_lea.vmem (!%p1302_p1), [#allocation2], %s692_s8  ;;  %p1303_p4 = scmp.ne.s32.totalorder (!%p1302_p1), %s1295_s24, 0 }
  0x4f   : > { %1011 = dma.done.wait (%p1303_p4), %s234_s29, 256  }
  0x50   : > { %1013 = vsyncadd (%p1303_p4), %s234_s29, 4294967040  ;;  %p1304_p6 = scmp.eq.s32.totalorder %s1097_s22, 0 }
  0x52   : > { %1015 = dma.done.wait (%p1304_p6), [#allocation6], 2048   ;;  %p1305_p8 = pmov %p1304_p6 }
  0x53   : > { %v854_v0 = vld [vmem:[#allocation5 + $0x38] sm:$0xff]   ;;  %v855_v1 = vld [vmem:[#allocation5 + $0x30] sm:$0xff]   ;;  %v856_v2 = vld [vmem:[#allocation5 + $0x28] sm:$0xff]   ;;  %s695_s12 = sshll.u32 %s1212_s30, 5  ;;  %s722_s14 = sshll.u32 %s1097_s22, 9 }
  0x54   : > { %1017 = vsyncadd (%p1305_p8), [#allocation6], 4294965248  ;;  %743 = vmatprep.subr.bf16.mxu0 %v854_v0  ;;  %v857_v3 = vld [vmem:[#allocation5 + $0x20] sm:$0xff]   ;;  %v864_v5 = vld [vmem:[#allocation7 + $0x38] sm:$0xff]   ;;  %s271_s13 = scalar_lea.vmem [#allocation8], %s695_s12  ;;  %s1239_s17 = scalar_lea.hbm %s1289_s5, %s722_s14 }
  0x55   : > { %744 = vmatpush3.bf16.msra.mxu0 %v854_v0  ;;  %v862_v4 = vld [vmem:[%s1216_s6] sm:$0xff]   ;;  %v858_v7 = vld [vmem:[#allocation5 + $0x18] sm:$0xff]   ;;  %763 = vmatprep.subr.bf16.mxu1 %v864_v5  ;;  %v866_v9 = vld [vmem:[#allocation7 + $0x28] sm:$0xff]   ;;  %s591_s7 = sshll.u32 %s271_s13, 4  ;;  %s578_s16 = scalar_lea.sflag [#allocation4], %s1212_s30  ;;  %s1241_s7 = int_to_ptr.vmem [resolvable:$true] %s591_s7 }
  0x56   : > { %745 = vmatprep.subr.bf16.mxu0 %v855_v1  ;;  %759 = vmatprep.mubr.bf16.mxu0 %v862_v4  ;;  %v865_v6 = vld [vmem:[#allocation7 + $0x30] sm:$0xff]   ;;  %v867_v10 = vld [vmem:[#allocation7 + $0x20] sm:$0xff]   ;;  %v860_v11 = vld [vmem:[#allocation5 + $0x8] sm:$0xff]   ;;  %s968_s8 = scalar_lea.vmem %s1241_s7, 512  ;;  %p1306_p2 = scmp.ne.s32.totalorder %s1299_s23, 0 }
  0x57   : > { %764 = vmatpush3.bf16.msra.mxu1 %v864_v5  ;;  %v859_v8 = vld [vmem:[#allocation5 + $0x10] sm:$0xff]   ;;  %v868_v12 = vld [vmem:[#allocation7 + $0x18] sm:$0xff]   ;;  %v861_v13 = vld [vmem:[#allocation5] sm:$0xff]   ;;  %p969_p5 = scmp.ne.s32.totalorder %s1241_s7, %s968_s8  ;;  %s1043_s22 = smov [#allocation8]  }
  0x58   : > { %765 = vmatprep.subr.bf16.mxu1 %v865_v6  ;;  %v863_v14 = vld [vmem:[%s1216_s6 + $0x8] sm:$0xff]   ;;  %v869_v15 = vld [vmem:[#allocation7 + $0x10] sm:$0xff]   ;;  %v871_v17 = vld [vmem:[#allocation7] sm:$0xff]   ;;  %s972_s29 = sshll.u32 %s1043_s22, 4  ;;  %s973_s29 = int_to_ptr.vmem [resolvable:$false] %s972_s29 }
  0x59   : > { %746 = vmatpush3.bf16.msra.mxu0 %v855_v1  ;;  %v870_v16 = vld [vmem:[#allocation7 + $0x8] sm:$0xff]   ;;  %v696_v20 = vld [vmem:[%s1286_s2] ss:$0 sm:$0xff]  ;;  %p970_p7 = pnand %p969_p5, %p1306_p2  ;;  %s974_s6 = scalar_lea.vmem %s973_s29, 1024 }
  0x5a   : > { %747 = vmatprep.subr.bf16.mxu0 %v856_v2  ;;  %v707_v33 = vld [vmem:[%s1288_s4] ss:$0 sm:$0xff]  ;;  %p975_p13 = scmp.lt.s32.totalorder %s1241_s7, %s973_s29  ;;  %p976_p0 = scmp.lt.s32.totalorder %s974_s6, %s968_s8 }
  0x5b   : > { %766 = vmatpush3.bf16.msra.mxu1 %v865_v6  ;;  %p971_p12 = pneg %p970_p7 }
  0x5c   : > { %767 = vmatprep.subr.bf16.mxu1 %v866_v9  ;;  %p977_p10 = por %p976_p0, %p975_p13 }
  0x5d   : > { %748 = vmatpush3.bf16.msra.mxu0 %v856_v2 }
  0x5e   : > { %749 = vmatprep.subr.bf16.mxu0 %v857_v3  ;;  %p978_p3 = pnand %p977_p10, %p971_p12 }
  0x5f   : > { %768 = vmatpush3.bf16.msra.mxu1 %v866_v9 }
  0x60   : > { %769 = vmatprep.subr.bf16.mxu1 %v867_v10 }
  0x61   : > { %750 = vmatpush3.bf16.msra.mxu0 %v857_v3 }
  0x62   : > { %751 = vmatprep.subr.bf16.mxu0 %v858_v7 }
  0x63   : > { %770 = vmatpush3.bf16.msra.mxu1 %v867_v10 }
  0x64   : > { %771 = vmatprep.subr.bf16.mxu1 %v868_v12 }
  0x65   : > { %752 = vmatpush3.bf16.msra.mxu0 %v858_v7 }
  0x66   : > { %753 = vmatprep.subr.bf16.mxu0 %v859_v8 }
  0x67   : > { %772 = vmatpush3.bf16.msra.mxu1 %v868_v12 }
  0x68   : > { %773 = vmatprep.subr.bf16.mxu1 %v869_v15 }
  0x69   : > { %754 = vmatpush3.bf16.msra.mxu0 %v859_v8 }
  0x6a   : > { %755 = vmatprep.subr.bf16.mxu0 %v860_v11 }
  0x6b   : > { %774 = vmatpush3.bf16.msra.mxu1 %v869_v15 }
  0x6c   : > { %775 = vmatprep.subr.bf16.mxu1 %v870_v16 }
  0x6d   : > { %756 = vmatpush3.bf16.msra.mxu0 %v860_v11 }
  0x6e   : > { %757 = vmatprep.subr.bf16.mxu0 %v861_v13 }
  0x6f   : > { %776 = vmatpush3.bf16.msra.mxu1 %v870_v16 }
  0x70   : > { %777 = vmatprep.subr.bf16.mxu1 %v871_v17 }
  0x71   : > { %758 = vmatpush3.bf16.msra.mxu0 %v861_v13 }
  0x73   : > { %778 = vmatpush3.bf16.msra.mxu1 %v871_v17 }
  0x74   : > { %760 = vmatmul.mubr.bf16.vlgmr.msra.gmra.mxu0 %v863_v14 }
 0x134   : > { %v761_v18 = vpop.f32.mrf.mxu0 }
 0x135   : > { %v405_v24 = vadd.f32 %v761_v18, %v696_v20 }
 0x136   : > { %v396_v19 = vpop.f32.mrf.mxu0 }
 0x137   : > { %v397_v22 = vadd.f32 %v696_v20, %v396_v19  ;;  %v413_v30 = vmax.f32 %v405_v24, 0.0 }
 0x138   : > { %v762_v21 = vpop.f32.mrf.mxu0 }
 0x139   : > { %v408_v23 = vadd.f32 %v762_v21, %v696_v20  ;;  %v411_v28 = vmax.f32 %v397_v22, 0.0 }
 0x13a   : > { %v399_v25 = vpop.f32.mrf.mxu0 }
 0x13b   : > { %v400_v26 = vadd.f32 %v696_v20, %v399_v25  ;;  %v414_v27 = vmax.f32 %v408_v23, 0.0 }
 0x13d   : > { %v412_v29 = vmax.f32 %v400_v26, 0.0  ;;  %v416_v32 = vpack.c.bf16 %v414_v27, %v413_v30 }
 0x13f   : > { %v415_v31 = vpack.c.bf16 %v412_v29, %v411_v28 }
 0x141   : > { %779 = vmatprep.mubr.bf16.mxu1 %v415_v31 }
 0x142   : > { %780 = vmatmul.mubr.bf16.vlgmr.msra.gmra.mxu1 %v416_v32 }
 0x202   : > { %v781_v34 = vpop.f32.mrf.mxu1 }
 0x203   : > { %v531_v35 = vadd.f32 %v781_v34, %v707_v33 }
 0x204   : > { %v522_v36 = vpop.f32.mrf.mxu1 }
 0x205   : > { %v523_v37 = vadd.f32 %v707_v33, %v522_v36  ;;  %541 = vmax.xlane.f32.xlu1 %v531_v35 }
 0x206   : > { %v782_v38 = vpop.f32.mrf.mxu1 }
 0x207   : > { %v534_v39 = vadd.f32 %v782_v38, %v707_v33  ;;  %537 = vmax.xlane.f32.xlu0 %v523_v37 }
 0x208   : > { %v525_v40 = vpop.f32.mrf.mxu1 }
 0x209   : > { %v526_v41 = vadd.f32 %v707_v33, %v525_v40  ;;  %543 = vmax.xlane.f32.xlu1 %v534_v39 }
 0x20b   : > { %539 = vmax.xlane.f32.xlu0 %v526_v41 }
 0x28e   : > { %v542_v42 = vpop.xlane.xlu1 %541 }
 0x28f   : > { %v547_v43 = vsub.f32 %v531_v35, %v542_v42 }
 0x290   : > { %v538_v44 = vpop.xlane.xlu0 %537 }
 0x291   : > { %v545_v45 = vsub.f32 %v523_v37, %v538_v44  ;;  %v553_v48 = vmul.f32 1.442695, %v547_v43 }
 0x292   : > { %v544_v46 = vpop.xlane.xlu1 %543 }
 0x293   : > { %v549_v47 = vmul.f32 1.442695, %v545_v45  ;;  %v548_v50 = vsub.f32 %v534_v39, %v544_v46 }
 0x294   : > { %v540_v49 = vpop.xlane.xlu0 %539 }
 0x295   : > { %872 = vpow2.f32 %v549_v47  ;;  %v546_v51 = vsub.f32 %v526_v41, %v540_v49  ;;  %v555_v53 = vmul.f32 1.442695, %v548_v50 }
 0x296   : > { %874 = vpow2.f32 %v553_v48 }
 0x297   : > { %v551_v52 = vmul.f32 1.442695, %v546_v51 }
 0x299   : > { %876 = vpow2.f32 %v551_v52 }
 0x29a   : > { %878 = vpow2.f32 %v555_v53 }
 0x2a2   : > { %v873_v54 = vpop.eup %872 }
 0x2a3   : > { %557 = vadd.xlane.f32.xlu0 %v873_v54  ;;  %v875_v55 = vpop.eup %874 }
 0x2a6   : > { %v877_v56 = vpop.eup %876 }
 0x2a7   : > { %561 = vadd.xlane.f32.xlu0 %v875_v55  ;;  %559 = vadd.xlane.f32.xlu1 %v877_v56  ;;  %v879_v57 = vpop.eup %878 }
 0x2ab   : > { %563 = vadd.xlane.f32.xlu1 %v879_v57 }
 0x32c   : > { %v558_v58 = vpop.xlane.xlu0 %557 }
 0x32d   : > { %880 = vrcp.f32 %v558_v58 }
 0x330   : > { %v560_v59 = vpop.xlane.xlu1 %559  ;;  %v562_v60 = vpop.xlane.xlu0 %561 }
 0x331   : > { %882 = vrcp.f32 %v560_v59 }
 0x332   : > { %884 = vrcp.f32 %v562_v60 }
 0x334   : > { %v564_v61 = vpop.xlane.xlu1 %563 }
 0x335   : > { %886 = vrcp.f32 %v564_v61 }
 0x33a   : > { %v881_v62 = vpop.eup %880 }
 0x33b   : > { %v569_v63 = vmul.f32 %v881_v62, %v873_v54 }
 0x33d   : > { %573 = vst [vmem:[%s271_s13] sm:$0xff] %v569_v63 }
 0x33e   : > { %v883_v0 = vpop.eup %882 }
 0x33f   : > { %v885_v1 = vpop.eup %884  ;;  %v570_v2 = vmul.f32 %v883_v0, %v877_v56 }
 0x340   : > { %v571_v3 = vmul.f32 %v885_v1, %v875_v55 }
 0x341   : > { %574 = vst [vmem:[%s271_s13 + $0x8] sm:$0xff] %v570_v2 }
 0x342   : > { %v887_v4 = vpop.eup %886  ;;  %575 = vst [vmem:[%s271_s13 + $0x10] sm:$0xff] %v571_v3 }
 0x343   : > { %v572_v5 = vmul.f32 %v887_v4, %v879_v57 }
 0x345   : > { %576 = vst [vmem:[%s271_s13 + $0x18] sm:$0xff] %v572_v5 }
 0x346   : > { %981 = shalt.err (!%p978_p3)
}
 0x347   : > { %s982_s24 = scalar_lea.hbm %s1239_s17, 512  ;;  %s986_s10 = scalar_lea.hbm %s1289_s5, 1024 }
 0x348   : > { %p983_p11 = scmp.ne.s32.totalorder %s1239_s17, %s982_s24  ;;  %p987_p4 = scmp.lt.s32.totalorder %s1239_s17, %s1289_s5 }
 0x349   : > { %p988_p6 = scmp.lt.s32.totalorder %s986_s10, %s982_s24 }
 0x34a   : > { %p984_p9 = pnand %p983_p11, %p1306_p2 }
 0x34b   : > { %p989_p8 = por %p988_p6, %p987_p4 }
 0x34c   : > { %p985_p1 = pneg %p984_p9 }
 0x34e   : > { %p990_p5 = pnand %p989_p8, %p985_p1 }
 0x350   : > { %993 = shalt.err (!%p990_p5)
}
 0x351   : > { %s1044_s14 = smov 128   ;;  %s1045_s28 = smov 8  }
 0x352   : > { %793 = dma.vmem_to_hbm [thread:$0]  (%p1306_p2), %s1241_s7, 512, %s1239_s17, %s578_s16, %s1044_s14, %s1044_s14, %s1045_s28  }
 0x353 PF: > { %s606_s11 = sand.u32 1, %s1024_s18   ;;  %p1307_p7 = scmp.ne.s32.totalorder %s1296_s25, 0 }
 0x354   : > { %p1308_p12 = scmp.ge.s32.totalorder %s1036_s21, 2  ;;  %s607_s8 = scalar_lea.sflag [#allocation4], %s606_s11 }
 0x356   : > { %p807_p13 = pnand %p1308_p12, %p1307_p7 }
 0x358   : > { %p808_p0 = pneg %p807_p13 }
 0x35a   : > { %1019 = dma.done.wait (%p808_p0), %s607_s8, 512  }
 0x35b   : > { %1021 = vsyncadd (%p808_p0), %s607_s8, 4294966784  ;;  %p19_p10 = scmp.ge.s32.totalorder %s1154_s15, 4   ;;  %s1309_s18 = smov %s1028_s19 }
 0x35c   : > { %s1310_s19 = smov %s1032_s20  ;;  %s1311_s20 = smov %s1170_s27 }
 0x35d   : > { %s1312_s21 = smov %s1154_s15  ;;  %21 = sbr.rel (!%p19_p10) target bundleno = 6 (0x6), region = 93 }
 0x362   :  { %612 = vsyncpa [#allocation3], 1 }
 0x363   :  { %614 = vsyncpa [#allocation3 + $0x1], 1 }
 0x364   :  { %615 = vsyncpa [#allocation6], 1 }
 0x365   :  { %616 = vsyncpa [#allocation4], 1 }
 0x366   :  { %618 = vsyncpa [#allocation4 + $0x1], 1 }

</bundles_post_ra>
